<compile_context>
chip_gen: v7x
topology: tpu7x:2x2x1
jax: 0.10.0
libtpu: 0.0.40
codegen_flags: <defaults>
</compile_context>

<pallas_src>
import functools

import jax
import jax.numpy as jnp
from jax import lax
from jax.experimental import pallas as pl
from jax.experimental.pallas import tpu as pltpu


def resnet_kernel(x_ref, wxT_ref, w2bT_ref, b1_ref, b2_ref, o_ref, *, n2):
    # x_ref   : [TB, n1]      batch-major row tile (as laid out in HBM)
    # wxT_ref : [2*n2, n1]    [W1 | W2a]^T, VMEM-resident
    # w2bT_ref: [n2, n2]      W2b^T, VMEM-resident
    # b1_ref  : [n2, 1]       column bias (broadcasts over lanes)
    # b2_ref  : [n2, 1]
    # o_ref   : [n2, TB]      feature-major output tile (lane-dense stores)
    x = x_ref[...]
    # One fused MXU pass, contracting over n1 on BOTH operands' last dim, so
    # the batch tile lands on the lane axis of the f32 accumulator:
    #   y = WxT (.) x  ->  [2*n2, TB]
    y = lax.dot_general(wxT_ref[...], x, (((1,), (1,)), ((), ())),
                        preferred_element_type=jnp.float32)
    # Sublane split at row n2 (multiple of 8 for f32) -> free, no lane shuffles.
    feat = jnp.maximum(y[:n2, :] + b1_ref[...], 0.0)          # [n2, TB] f32
    out = y[n2:, :] + b2_ref[...]                             # [n2, TB] f32
    # agg(cat([x, feat]))^T == W2a^T @ x^T + W2b^T @ feat^T + b2 ;
    # the x-part is already in `out` via the fused WxT matmul above.
    out = out + jnp.dot(w2bT_ref[...], feat.astype(w2bT_ref.dtype),
                        preferred_element_type=jnp.float32)
    o_ref[...] = out.astype(o_ref.dtype)


def prepare_params(w1, b1, w2, b2, compute_dtype=jnp.float32):
    """One-time weight prep (outside the hot path): fuse, transpose, cast.

    w1: [n1, n2], b1: [n2], w2: [n1+n2, n2], b2: [n2]   (already [in, out]).
    Returns feature-major operands for the transposed-layout kernel.
    """
    n1, n2 = w1.shape
    # [W1 | W2a]^T : rows 0..n2-1 = W1^T, rows n2..2n2-1 = W2[:n1]^T
    wxT = jnp.concatenate([w1.T, w2[:n1].T], axis=0).astype(compute_dtype)
    w2bT = w2[n1:].T.astype(compute_dtype)                    # [n2, n2]
    b1_col = b1.reshape(n2, 1).astype(jnp.float32)
    b2_col = b2.reshape(n2, 1).astype(jnp.float32)
    return wxT, w2bT, b1_col, b2_col


def _choose_row_tile(B, max_block):
    """Largest 128-aligned row tile that divides B, with >=2 grid steps when
    the batch is big enough (so v7x's two TensorCores both get work).
    Falls back to a single full-batch block (no padding ever needed)."""
    if B >= 256 and B % 128 == 0:
        nsteps = max(2, pl.cdiv(B, max_block))
        while B % nsteps != 0 or (B // nsteps) % 128 != 0:
            nsteps += 1            # terminates: nsteps = B // 128 always works
        return B // nsteps, nsteps
    return B, 1


def resnet_forward(x, params, *, max_block=2048, out_dtype=jnp.float32):
    """x: [B, n1]; params from prepare_params(). Returns [B, n2]."""
    wxT, w2bT, b1_col, b2_col = params
    B, n1 = x.shape
    n2 = b1_col.shape[0]
    assert wxT.shape == (2 * n2, n1) and w2bT.shape == (n2, n2)

    x = x.astype(wxT.dtype)  # match MXU operand dtype (e.g. bf16)

    block_b, nsteps = _choose_row_tile(B, max_block)

    kernel = functools.partial(resnet_kernel, n2=n2)

    out_t = pl.pallas_call(
        kernel,
        out_shape=jax.ShapeDtypeStruct((n2, B), out_dtype),
        grid=(nsteps,),
        in_specs=[
            pl.BlockSpec((block_b, n1), lambda i: (i, 0)),    # x rows, tiled
            pl.BlockSpec((2 * n2, n1), lambda i: (0, 0)),     # WxT, VMEM-resident
            pl.BlockSpec((n2, n2), lambda i: (0, 0)),         # W2bT, VMEM-resident
            pl.BlockSpec((n2, 1), lambda i: (0, 0)),          # b1 (column)
            pl.BlockSpec((n2, 1), lambda i: (0, 0)),          # b2 (column)
        ],
        # Lane-dense output: batch tile (multiple of 128, or the full batch)
        # sits on the lane axis of the stored block.
        out_specs=pl.BlockSpec((n2, block_b), lambda i: (0, i)),
        compiler_params=pltpu.CompilerParams(
            dimension_semantics=("parallel",)),               # megacore on v7x
    )(x, wxT, w2bT, b1_col, b2_col)

    # Layout plumbing back to the module's [B, n2] convention (tiny transpose).
    return out_t.T


def reference_forward(x, w1, b1, w2, b2, compute_dtype=jnp.float32):
    """Plain-JAX reference with matching operand dtype / f32 accumulation."""
    xc = x.astype(compute_dtype)
    w1c = w1.astype(compute_dtype)
    w2c = w2.astype(compute_dtype)
    feat = jnp.maximum(
        jnp.dot(xc, w1c, preferred_element_type=jnp.float32) + b1, 0.0)
    cat = jnp.concatenate([xc, feat.astype(compute_dtype)], axis=-1)
    return jnp.dot(cat, w2c, preferred_element_type=jnp.float32) + b2


if __name__ == "__main__":
    B, n1, n2 = 512, 32, 16   # batch split into 2 grid steps of 256 rows

    key = jax.random.PRNGKey(0)
    kx, k1, k2, k3, k4 = jax.random.split(key, 5)

    x = jax.random.normal(kx, (B, n1), dtype=jnp.float32)

    # Deterministic init mimicking nn.Linear (uniform +/- 1/sqrt(fan_in)),
    # stored as [in_features, out_features].
    bound1 = 1.0 / (n1 ** 0.5)
    w1 = jax.random.uniform(k1, (n1, n2), minval=-bound1, maxval=bound1,
                            dtype=jnp.float32)
    b1 = jax.random.uniform(k2, (n2,), minval=-bound1, maxval=bound1,
                            dtype=jnp.float32)

    bound2 = 1.0 / ((n1 + n2) ** 0.5)
    w2 = jax.random.uniform(k3, (n1 + n2, n2), minval=-bound2, maxval=bound2,
                            dtype=jnp.float32)
    b2 = jax.random.uniform(k4, (n2,), minval=-bound2, maxval=bound2,
                            dtype=jnp.float32)

    # --- f32 path: tight tolerance vs f32 reference ------------------------
    params_f32 = prepare_params(w1, b1, w2, b2, compute_dtype=jnp.float32)
    out_f32 = jax.block_until_ready(resnet_forward(x, params_f32))
    ref_f32 = reference_forward(x, w1, b1, w2, b2, compute_dtype=jnp.float32)
    assert out_f32.shape == (B, n2)
    assert jnp.allclose(out_f32, ref_f32, atol=2e-5, rtol=2e-5), \
        "f32 mismatch vs JAX reference"

    # --- bf16 operands / f32 accumulation: MXU-native path -----------------
    params_bf16 = prepare_params(w1, b1, w2, b2, compute_dtype=jnp.bfloat16)
    out_bf16 = jax.block_until_ready(resnet_forward(x, params_bf16))
    ref_bf16 = reference_forward(x, w1, b1, w2, b2, compute_dtype=jnp.bfloat16)
    assert out_bf16.shape == (B, n2)
    assert jnp.allclose(out_bf16, ref_bf16, atol=1e-2, rtol=1e-2), \
        "bf16 mismatch vs JAX reference"

    print("KERNEL_OK")
</pallas_src>

<mosaic_0001>
module attributes {stable_mosaic.version = 11 : i64} {
  func.func @resnet_kernel(%arg0: i32, %arg1: memref<256x32xf32, #tpu.memory_space<vmem>>, %arg2: memref<32x32xf32, #tpu.memory_space<vmem>>, %arg3: memref<16x16xf32, #tpu.memory_space<vmem>>, %arg4: memref<16x1xf32, #tpu.memory_space<vmem>>, %arg5: memref<16x1xf32, #tpu.memory_space<vmem>>, %arg6: memref<16x256xf32, #tpu.memory_space<vmem>>) attributes {dimension_semantics = [#tpu.dimension_semantics<parallel>], iteration_bounds = array<i64: 2>, scalar_prefetch = 0 : i64, scratch_operands = 0 : i64, tpu.core_type = #tpu.core_type<tc>, window_params = [{transform_indices = @transform_0, window_bounds = array<i64: 256, 32>}, {pipeline_mode = #tpu.pipeline_mode<synchronous>, transform_indices = @transform_1, window_bounds = array<i64: 32, 32>}, {pipeline_mode = #tpu.pipeline_mode<synchronous>, transform_indices = @transform_2, window_bounds = array<i64: 16, 16>}, {pipeline_mode = #tpu.pipeline_mode<synchronous>, transform_indices = @transform_3, window_bounds = array<i64: 16, 1>}, {pipeline_mode = #tpu.pipeline_mode<synchronous>, transform_indices = @transform_4, window_bounds = array<i64: 16, 1>}, {transform_indices = @transform_5, window_bounds = array<i64: 16, 256>}]} {
    %c0 = arith.constant 0 : index
    %c0_0 = arith.constant 0 : index
    %0 = vector.load %arg1[%c0, %c0_0] : memref<256x32xf32, #tpu.memory_space<vmem>>, vector<256x32xf32>
    %c0_1 = arith.constant 0 : index
    %c0_2 = arith.constant 0 : index
    %1 = vector.load %arg2[%c0_1, %c0_2] : memref<32x32xf32, #tpu.memory_space<vmem>>, vector<32x32xf32>
    %cst = arith.constant dense<0.000000e+00> : vector<32x256xf32>
    %2 = tpu.matmul %1, %0, %cst {dimension_numbers = #tpu.dot_dimension_numbers<[1], [1], [0], [0], [0, 0, 1, 0], [], []>} : vector<32x32xf32>, vector<256x32xf32>, vector<32x256xf32> -> vector<32x256xf32>
    %3 = vector.extract_strided_slice %2 {offsets = [0, 0], sizes = [16, 256], strides = [1, 1]} : vector<32x256xf32> to vector<16x256xf32>
    %c0_3 = arith.constant 0 : index
    %c0_4 = arith.constant 0 : index
    %4 = vector.load %arg4[%c0_3, %c0_4] : memref<16x1xf32, #tpu.memory_space<vmem>>, vector<16x1xf32>
    %5 = vector.broadcast %4 : vector<16x1xf32> to vector<16x256xf32>
    %6 = arith.addf %3, %5 : vector<16x256xf32>
    %cst_5 = arith.constant 0.000000e+00 : f32
    %7 = vector.broadcast %cst_5 : f32 to vector<16x256xf32>
    %8 = arith.maximumf %6, %7 : vector<16x256xf32>
    %9 = vector.extract_strided_slice %2 {offsets = [16, 0], sizes = [16, 256], strides = [1, 1]} : vector<32x256xf32> to vector<16x256xf32>
    %c0_6 = arith.constant 0 : index
    %c0_7 = arith.constant 0 : index
    %10 = vector.load %arg5[%c0_6, %c0_7] : memref<16x1xf32, #tpu.memory_space<vmem>>, vector<16x1xf32>
    %11 = vector.broadcast %10 : vector<16x1xf32> to vector<16x256xf32>
    %12 = arith.addf %9, %11 : vector<16x256xf32>
    %c0_8 = arith.constant 0 : index
    %c0_9 = arith.constant 0 : index
    %13 = vector.load %arg3[%c0_8, %c0_9] : memref<16x16xf32, #tpu.memory_space<vmem>>, vector<16x16xf32>
    %cst_10 = arith.constant dense<0.000000e+00> : vector<16x256xf32>
    %14 = tpu.matmul %13, %8, %cst_10 {dimension_numbers = #tpu.dot_dimension_numbers<[1], [0], [0], [1], [0, 0, 1, 1], [], []>} : vector<16x16xf32>, vector<16x256xf32>, vector<16x256xf32> -> vector<16x256xf32>
    %15 = arith.addf %12, %14 : vector<16x256xf32>
    %c0_11 = arith.constant 0 : index
    %c0_12 = arith.constant 0 : index
    %16 = vector.load %arg6[%c0_11, %c0_12] : memref<16x256xf32, #tpu.memory_space<vmem>>, vector<16x256xf32>
    tpu.vector_store %arg6[%c0_11, %c0_12], %15 {strides = array<i32>} : memref<16x256xf32, #tpu.memory_space<vmem>>, vector<16x256xf32>,
    return
  }
  func.func @transform_0(%arg0: i32) -> (i32, i32) {
    %c0_i32 = arith.constant 0 : i32
    %c0_i32_0 = arith.constant 0 : i32
    return %arg0, %c0_i32 : i32, i32
  }
  func.func @transform_1(%arg0: i32) -> (i32, i32) {
    %c0_i32 = arith.constant 0 : i32
    %c0_i32_0 = arith.constant 0 : i32
    %c0_i32_1 = arith.constant 0 : i32
    return %c0_i32, %c0_i32_0 : i32, i32
  }
  func.func @transform_2(%arg0: i32) -> (i32, i32) {
    %c0_i32 = arith.constant 0 : i32
    %c0_i32_0 = arith.constant 0 : i32
    %c0_i32_1 = arith.constant 0 : i32
    return %c0_i32, %c0_i32_0 : i32, i32
  }
  func.func @transform_3(%arg0: i32) -> (i32, i32) {
    %c0_i32 = arith.constant 0 : i32
    %c0_i32_0 = arith.constant 0 : i32
    %c0_i32_1 = arith.constant 0 : i32
    return %c0_i32, %c0_i32_0 : i32, i32
  }
  func.func @transform_4(%arg0: i32) -> (i32, i32) {
    %c0_i32 = arith.constant 0 : i32
    %c0_i32_0 = arith.constant 0 : i32
    %c0_i32_1 = arith.constant 0 : i32
    return %c0_i32, %c0_i32_0 : i32, i32
  }
  func.func @transform_5(%arg0: i32) -> (i32, i32) {
    %c0_i32 = arith.constant 0 : i32
    %c0_i32_0 = arith.constant 0 : i32
    return %c0_i32, %arg0 : i32, i32
  }
}

</mosaic_0001>

<bundles_post_ra>
// kernel: tpu_custom_call.1
= control target key start
LH: loop header
LB: loop body
LE: loop exit
PB: predicated region body
PF: predicated region fallthrough
CT: control target
= control target key end

     0   :  { %10 = vsyncpa [#allocation3], 0  ;;  %s1231_s0 = inlined_call_operand.vmem [shape: f32[512,32], index: 0, kind: input, shape index: {}]   ;;  %s1232_s1 = inlined_call_operand.vmem [shape: f32[32,32], index: 1, kind: input, shape index: {}]   ;;  %s1233_s2 = inlined_call_operand.vmem [shape: f32[16,16], index: 2, kind: input, shape index: {}]   ;;  %s1234_s3 = inlined_call_operand.vmem [shape: f32[16,1], index: 3, kind: input, shape index: {}]   ;;  %s1235_s4 = inlined_call_operand.vmem [shape: f32[16,1], index: 4, kind: input, shape index: {}]   ;;  %s1236_s5 = inlined_call_operand.hbm [shape: f32[16,512], index: 5, kind: output, shape index: {}]  }
   0x1   :  { %12 = vsyncpa [#allocation3 + $0x1], 0  ;;  %s979_s18 = smov 0   ;;  %s981_s19 = smov 0  }
   0x2   :  { %s983_s20 = smov 0   ;;  %s985_s21 = smov 0  }
   0x3 LB: > { %s1000_s22 = sadd.s32 4294967295, %s941_s21   ;;  %s666_s23 = sadd.s32 4294967294, %s941_s21   ;;  %s941_s21 = sphi %s985_s21, %s1244_s21   ;;  %s937_s20 = sphi %s983_s20, %s1243_s20   ;;  %s933_s19 = sphi %s981_s19, %s1242_s19   ;;  %s929_s18 = sphi %s979_s18, %s1241_s18  }
   0x4   : > { %s1004_s24 = sadd.s32 1, %s941_s21   ;;  %s135_s25 = sadd.s32 1, %s937_s20 }
   0x5   : > { %s132_s26 = ssub.s32 %s941_s21, %s1004_s24  ;;  %p145_p0 = scmp.ne.s32.totalorder %s937_s20, %s933_s19 }
   0x6   : > { %p133_p1 = scmp.eq.s32.totalorder %s132_s26, 0  ;;  %p146_p2 = scmp.eq.s32.totalorder %s1000_s22, 1 }
   0x7   : > { %p151_p3 = scmp.ne.s32.totalorder %s933_s19, %s929_s18  ;;  %p152_p4 = scmp.eq.s32.totalorder %s666_s23, 1 }
   0x8   : > { %s1015_s27 = scalar_select %p133_p1, %s937_s20, %s135_s25  }
   0x9   : > { %p1017_p5 = por %p146_p2, %p145_p0  ;;  %p1021_p6 = por %p152_p4, %p151_p3 }
   0xa   : > { %p669_p7 = scmp.ge.s32.totalorder %s941_s21, 1  ;;  %p191_p8 = scmp.lt.s32.totalorder %s941_s21, 3 }
   0xc   : > { %p192_p9 = pnand %p669_p7, %p191_p8 }
   0xd   : > { %s671_s30 = sshll.u32 (!%p192_p9), %s1000_s22, 5  ;;  %vm262_vm0 = vcmask (!%p192_p9), 261120   ;;  %v1031_v0 = vld [vmem:[%s1232_s1] sm:$0xff] (!%p192_p9)  ;;  %v1036_v1 = vld [vmem:[%s1232_s1 + $0x8] sm:$0xff] (!%p192_p9)  ;;  %v943_v3 = vmov (!%p192_p9), 0   ;;  %v260_v54 = vld [vmem:[%s1232_s1 + $0x10] sm:$0xff] (!%p192_p9) }
   0xe   : > { %195 = sbr.rel (%p192_p9) target bundleno = 549 (0x225), region = 40  ;;  %v460_v2 = vld [vmem:[%s1234_s3] sm:$0xff] (!%p192_p9)  ;;  %p220_p10 = scmp.lt.s32.totalorder (!%p192_p9), %s671_s30, 63  ;;  %749 = vmatprep.mubr.msk.f32.mxu0 (!%p192_p9), %vm262_vm0, %v1031_v0  ;;  %751 = vmatprep.mubr.msk.f32.mxu1 (!%p192_p9), %vm262_vm0, %v1036_v1  ;;  %v461_v4 = vld [vmem:[%s1234_s3 + $0x8] sm:$0xff] (!%p192_p9)  ;;  %vm1055_vm1 = vmpackc.low (!%p192_p9), %vm262_vm0, %vm262_vm0  ;;  %v944_v56 = vmov (!%p192_p9), 0.0   ;;  %vm498_vm2 = vcmask (!%p192_p9), 130048  }
   0xf   : > { %877 = vset.pattern.permute.xlu0 (!%p192_p9), %v943_v3  ;;  %878 = vset.pattern.permute.xlu1 (!%p192_p9), %v943_v3  ;;  %v261_v55 = vld [vmem:[%s1232_s1 + $0x18] sm:$0xff] (!%p192_p9)  ;;  %v480_v57 = vld [vmem:[%s1235_s4] sm:$0xff] (!%p192_p9)  ;;  %v481_v58 = vld [vmem:[%s1235_s4 + $0x8] sm:$0xff] (!%p192_p9)  ;;  %s716_s23 = sshll.u32 (!%p192_p9), %s1000_s22, 8  ;;  %s945_s7 = smov (!%p192_p9), [#allocation2]  }
  0x10   : > { %464 = vperm.xlu0 (!%p192_p9), %877, %v460_v2   ;;  %484 = vperm.xlu1 (!%p192_p9), %878, %v480_v57   ;;  %s883_s8 = sshll.u32 (!%p192_p9), %s945_s7, 4  ;;  %s884_s8 = int_to_ptr.vmem [resolvable:$false] %s883_s8 }
  0x11   : > { %s885_s9 = scalar_lea.vmem (!%p192_p9), %s884_s8, 1024 }
  0x14   : > { %469 = vperm.xlu0 (!%p192_p9), %877, %v461_v4   ;;  %489 = vperm.xlu1 (!%p192_p9), %878, %v481_v58  }
  0x15   : > { %s1246_s30 = smov (!%p220_p10, %s671_s30), 63 }
  0x16   : > { %s672_s14 = sshll.u32 %s1246_s30, 3  ;;  %s1188_s30 = scalar_lea.hbm %s1236_s5, %s716_s23 }
  0x17   : > { %s1051_s17 = scalar_lea.vmem %s1231_s0, %s672_s14  ;;  %s216_s14 = sand.u32 1, %s933_s19  }
  0x18   : > { %v242_v6 = vld [vmem:[%s1051_s17 + $0x80] sm:$0xff]  ;;  %v243_v7 = vld [vmem:[%s1051_s17 + $0x88] sm:$0xff]  ;;  %v244_v11 = vld [vmem:[%s1051_s17 + $0x90] sm:$0xff]  ;;  %s670_s15 = sshll.u32 %s216_s14, 5  ;;  %s1190_s22 = scalar_lea.sflag [#allocation3], %s216_s14 }
  0x19   : > { %v226_v8 = vld [vmem:[%s1051_s17] sm:$0xff]  ;;  %v757_v9 = vpack.c.bf16 %v243_v7, %v242_v6  ;;  %v227_v10 = vld [vmem:[%s1051_s17 + $0x8] sm:$0xff]  ;;  %v245_v12 = vld [vmem:[%s1051_s17 + $0x98] sm:$0xff]  ;;  %s218_s16 = scalar_lea.vmem [#allocation2], %s670_s15 }
  0x1a   : > { %v760_v13 = vpack.c.bf16 %v227_v10, %v226_v8  ;;  %v763_v14 = vpack.c.bf16 %v245_v12, %v244_v11  ;;  %v228_v15 = vld [vmem:[%s1051_s17 + $0x10] sm:$0xff]  ;;  %v229_v16 = vld [vmem:[%s1051_s17 + $0x18] sm:$0xff]  ;;  %v246_v17 = vld [vmem:[%s1051_s17 + $0xa0] sm:$0xff] }
  0x1b   : > { %759 = vmatprep.subr.msk.bf16.mxu0 %vm1055_vm1, %v757_v9  ;;  %809 = vmatprep.subr.msk.bf16.mxu1 %vm1055_vm1, %v757_v9  ;;  %v247_v18 = vld [vmem:[%s1051_s17 + $0xa8] sm:$0xff]  ;;  %v766_v19 = vpack.c.bf16 %v229_v16, %v228_v15  ;;  %v230_v21 = vld [vmem:[%s1051_s17 + $0x20] sm:$0xff]  ;;  %v248_v23 = vld [vmem:[%s1051_s17 + $0xb0] sm:$0xff] }
  0x1c   : > { %762 = vmatpush3.bf16.xpose.msk.msra.mxu0 %vm1055_vm1, %v760_v13  ;;  %817 = vmatpush3.bf16.xpose.msk.msra.mxu1 %vm1055_vm1, %v760_v13  ;;  %v769_v20 = vpack.c.bf16 %v247_v18, %v246_v17  ;;  %v231_v22 = vld [vmem:[%s1051_s17 + $0x28] sm:$0xff]  ;;  %v249_v24 = vld [vmem:[%s1051_s17 + $0xb8] sm:$0xff]  ;;  %v232_v27 = vld [vmem:[%s1051_s17 + $0x30] sm:$0xff] }
  0x1d   : > { %765 = vmatprep.subr.msk.bf16.mxu0 %vm1055_vm1, %v763_v14  ;;  %810 = vmatprep.subr.msk.bf16.mxu1 %vm1055_vm1, %v763_v14  ;;  %v772_v25 = vpack.c.bf16 %v231_v22, %v230_v21  ;;  %v775_v26 = vpack.c.bf16 %v249_v24, %v248_v23  ;;  %v233_v28 = vld [vmem:[%s1051_s17 + $0x38] sm:$0xff]  ;;  %v250_v29 = vld [vmem:[%s1051_s17 + $0xc0] sm:$0xff]  ;;  %v251_v30 = vld [vmem:[%s1051_s17 + $0xc8] sm:$0xff] }
  0x1e   : > { %v778_v31 = vpack.c.bf16 %v233_v28, %v232_v27  ;;  %v781_v32 = vpack.c.bf16 %v251_v30, %v250_v29  ;;  %v234_v33 = vld [vmem:[%s1051_s17 + $0x40] sm:$0xff]  ;;  %v235_v34 = vld [vmem:[%s1051_s17 + $0x48] sm:$0xff]  ;;  %v252_v35 = vld [vmem:[%s1051_s17 + $0xd0] sm:$0xff] }
  0x1f   : > { %v253_v36 = vld [vmem:[%s1051_s17 + $0xd8] sm:$0xff]  ;;  %v784_v37 = vpack.c.bf16 %v235_v34, %v234_v33  ;;  %v236_v39 = vld [vmem:[%s1051_s17 + $0x50] sm:$0xff]  ;;  %v254_v41 = vld [vmem:[%s1051_s17 + $0xe0] sm:$0xff] }
  0x20   : > { %v787_v38 = vpack.c.bf16 %v253_v36, %v252_v35  ;;  %v237_v40 = vld [vmem:[%s1051_s17 + $0x58] sm:$0xff]  ;;  %v255_v42 = vld [vmem:[%s1051_s17 + $0xe8] sm:$0xff]  ;;  %v238_v45 = vld [vmem:[%s1051_s17 + $0x60] sm:$0xff] }
  0x21   : > { %v790_v43 = vpack.c.bf16 %v237_v40, %v236_v39  ;;  %v793_v44 = vpack.c.bf16 %v255_v42, %v254_v41  ;;  %v239_v46 = vld [vmem:[%s1051_s17 + $0x68] sm:$0xff]  ;;  %v256_v47 = vld [vmem:[%s1051_s17 + $0xf0] sm:$0xff]  ;;  %v257_v48 = vld [vmem:[%s1051_s17 + $0xf8] sm:$0xff] }
  0x22   : > { %v796_v49 = vpack.c.bf16 %v239_v46, %v238_v45  ;;  %v799_v50 = vpack.c.bf16 %v257_v48, %v256_v47  ;;  %v240_v51 = vld [vmem:[%s1051_s17 + $0x70] sm:$0xff]  ;;  %v241_v52 = vld [vmem:[%s1051_s17 + $0x78] sm:$0xff]  ;;  %v496_v11 = vld [vmem:[%s1233_s2] sm:$0xff]  ;;  %s604_s17 = sshll.u32 %s218_s16, 4  ;;  %s1183_s17 = int_to_ptr.vmem [resolvable:$true] %s604_s17 }
  0x23   : > { %v802_v53 = vpack.c.bf16 %v241_v52, %v240_v51  ;;  %v497_v12 = vld [vmem:[%s1233_s2 + $0x8] sm:$0xff]  ;;  %s879_s6 = scalar_lea.vmem %s1183_s17, 512  ;;  %p886_p0 = scmp.lt.s32.totalorder %s1183_s17, %s884_s8 }
  0x24   : > { %768 = vmatpush3.bf16.xpose.msk.msra.mxu0 %vm1055_vm1, %v766_v19  ;;  %818 = vmatpush3.bf16.xpose.msk.msra.mxu1 %vm1055_vm1, %v766_v19  ;;  %p880_p11 = scmp.ne.s32.totalorder %s1183_s17, %s879_s6  ;;  %p887_p1 = scmp.lt.s32.totalorder %s885_s9, %s879_s6 }
  0x25   : > { %771 = vmatprep.subr.msk.bf16.mxu0 %vm1055_vm1, %v769_v20  ;;  %811 = vmatprep.subr.msk.bf16.mxu1 %vm1055_vm1, %v769_v20 }
  0x26   : > { %p881_p12 = pnand %p880_p11, %p1017_p5  ;;  %p888_p2 = por %p887_p1, %p886_p0 }
  0x28   : > { %p882_p13 = pneg %p881_p12 }
  0x2a   : > { %p889_p3 = pnand %p888_p2, %p882_p13 }
  0x2c   : > { %774 = vmatpush3.bf16.xpose.msk.msra.mxu0 %vm1055_vm1, %v772_v25  ;;  %819 = vmatpush3.bf16.xpose.msk.msra.mxu1 %vm1055_vm1, %v772_v25 }
  0x2d   : > { %777 = vmatprep.subr.msk.bf16.mxu0 %vm1055_vm1, %v775_v26  ;;  %812 = vmatprep.subr.msk.bf16.mxu1 %vm1055_vm1, %v775_v26 }
  0x34   : > { %780 = vmatpush3.bf16.xpose.msk.msra.mxu0 %vm1055_vm1, %v778_v31  ;;  %820 = vmatpush3.bf16.xpose.msk.msra.mxu1 %vm1055_vm1, %v778_v31 }
  0x35   : > { %783 = vmatprep.subr.msk.bf16.mxu0 %vm1055_vm1, %v781_v32  ;;  %813 = vmatprep.subr.msk.bf16.mxu1 %vm1055_vm1, %v781_v32 }
  0x3c   : > { %786 = vmatpush3.bf16.xpose.msk.msra.mxu0 %vm1055_vm1, %v784_v37  ;;  %821 = vmatpush3.bf16.xpose.msk.msra.mxu1 %vm1055_vm1, %v784_v37 }
  0x3d   : > { %789 = vmatprep.subr.msk.bf16.mxu0 %vm1055_vm1, %v787_v38  ;;  %814 = vmatprep.subr.msk.bf16.mxu1 %vm1055_vm1, %v787_v38 }
  0x44   : > { %792 = vmatpush3.bf16.xpose.msk.msra.mxu0 %vm1055_vm1, %v790_v43  ;;  %822 = vmatpush3.bf16.xpose.msk.msra.mxu1 %vm1055_vm1, %v790_v43 }
  0x45   : > { %795 = vmatprep.subr.msk.bf16.mxu0 %vm1055_vm1, %v793_v44  ;;  %815 = vmatprep.subr.msk.bf16.mxu1 %vm1055_vm1, %v793_v44 }
  0x4c   : > { %798 = vmatpush3.bf16.xpose.msk.msra.mxu0 %vm1055_vm1, %v796_v49  ;;  %823 = vmatpush3.bf16.xpose.msk.msra.mxu1 %vm1055_vm1, %v796_v49 }
  0x4d   : > { %801 = vmatprep.subr.msk.bf16.mxu0 %vm1055_vm1, %v799_v50  ;;  %816 = vmatprep.subr.msk.bf16.mxu1 %vm1055_vm1, %v799_v50 }
  0x54   : > { %804 = vmatpush3.bf16.xpose.msk.msra.mxu0 %vm1055_vm1, %v802_v53  ;;  %824 = vmatpush3.bf16.xpose.msk.msra.mxu1 %vm1055_vm1, %v802_v53 }
  0x5b   : > { %750 = vmatmul.mubr.msk.f32.vlgmr.msra.gmra.mrb[0].mxu0 %vm262_vm0, %v1031_v0  ;;  %752 = vmatmul.mubr.msk.f32.vlgmr.msra.gmra.mrb[0].mxu1 %vm262_vm0, %v1036_v1 }
  0x5c   : > { %753 = vmatprep.mubr.msk.f32.mxu1 %vm262_vm0, %v260_v54  ;;  %569 = vmatprep.mubr.f32.mxu0 %v944_v56 }
  0x5f   : > { %754 = vmatmul.mubr.msk.f32.gmra.mrb[2].mxu1 %vm262_vm0, %v260_v54 }
  0x60   : > { %755 = vmatprep.mubr.msk.f32.mxu1 %vm262_vm0, %v261_v55 }
  0x63   : > { %756 = vmatmul.mubr.msk.f32.gmra.mrb[4].mxu1 %vm262_vm0, %v261_v55 }
  0x8f   : > { %v465_v59 = vpop.permute.xlu0 %464  ;;  %v485_v17 = vpop.permute.xlu1 %484 }
  0x93   : > { %v470_v60 = vpop.permute.xlu0 %469  ;;  %v490_v20 = vpop.permute.xlu1 %489 }
 0x12e   : > { %v437_v61 = vpop.f32.mrb[0].mxu0  ;;  %v443_v62 = vpop.f32.mrb[0].mxu1 }
 0x12f   : > { %v472_v63 = vadd.f32 %v465_v59, %v437_v61  ;;  %v474_v0 = vadd.f32 %v470_v60, %v443_v62  ;;  %v439_v1 = vpop.f32.mrb[1].mxu0  ;;  %v445_v2 = vpop.f32.mrb[1].mxu1 }
 0x130   : > { %v473_v3 = vadd.f32 %v465_v59, %v439_v1  ;;  %v475_v4 = vadd.f32 %v470_v60, %v445_v2 }
 0x131   : > { %v476_v5 = vmax.f32 %v472_v63, 0.0  ;;  %v478_v6 = vmax.f32 %v474_v0, 0.0 }
 0x132   : > { %v477_v7 = vmax.f32 %v473_v3, 0.0  ;;  %v479_v8 = vmax.f32 %v475_v4, 0.0  ;;  %v449_v13 = vpop.f32.mrb[2].mxu1 }
 0x133   : > { %v807_v9 = vpack.c.bf16 %v478_v6, %v476_v5  ;;  %v451_v14 = vpop.f32.mrb[3].mxu1  ;;  %v492_v18 = vadd.f32 %v485_v17, %v449_v13 }
 0x134   : > { %v805_v10 = vpack.c.bf16 %v479_v8, %v477_v7  ;;  %v493_v19 = vadd.f32 %v485_v17, %v451_v14 }
 0x136   : > { %806 = vmatprep.subr.bf16.mxu0 %v805_v10  ;;  %v455_v15 = vpop.f32.mrb[4].mxu1 }
 0x137   : > { %808 = vmatpush1.bf16.msra.mxu0 %v807_v9  ;;  %v457_v16 = vpop.f32.mrb[5].mxu1  ;;  %v494_v25 = vadd.f32 %v490_v20, %v455_v15 }
 0x138   : > { %v495_v26 = vadd.f32 %v490_v20, %v457_v16 }
 0x13a   : > { %709 = vmatmul.mubr.msk.f32.vlgmr.msra.gmra.mrb[2].mxu0 %vm498_vm2, %v496_v11 }
 0x13b   : > { %575 = vmatprep.mubr.f32.mxu0 %v944_v56 }
 0x13e   : > { %710 = vmatmul.mubr.msk.f32.gmra.mrb[4].mxu0 %vm498_vm2, %v497_v12 }
 0x20d   : > { %v571_v21 = vpop.f32.mrb[2].mxu0 }
 0x20e   : > { %v582_v22 = vadd.f32 %v571_v21, %v492_v18  ;;  %v573_v23 = vpop.f32.mrb[3].mxu0 }
 0x20f   : > { %v583_v24 = vadd.f32 %v573_v23, %v493_v19 }
 0x210   : > { %586 = vst [vmem:[%s218_s16] sm:$0xff] %v582_v22 }
 0x211   : > { %587 = vst [vmem:[%s218_s16 + $0x8] sm:$0xff] %v583_v24  ;;  %v577_v27 = vpop.f32.mrb[4].mxu0 }
 0x212   : > { %v584_v28 = vadd.f32 %v577_v27, %v494_v25  ;;  %v579_v29 = vpop.f32.mrb[5].mxu0 }
 0x213   : > { %v585_v30 = vadd.f32 %v579_v29, %v495_v26 }
 0x214   : > { %588 = vst [vmem:[%s218_s16 + $0x10] sm:$0xff] %v584_v28 }
 0x215   : > { %589 = vst [vmem:[%s218_s16 + $0x18] sm:$0xff] %v585_v30 }
 0x216   : > { %892 = shalt.err (!%p889_p3)
}
 0x217   : > { %s893_s10 = scalar_lea.hbm %s1188_s30, 512  ;;  %s897_s13 = scalar_lea.hbm %s1236_s5, 1024 }
 0x218   : > { %p894_p4 = scmp.ne.s32.totalorder %s1188_s30, %s893_s10  ;;  %p898_p9 = scmp.lt.u32.totalorder %s1188_s30, %s1236_s5 }
 0x219   : > { %p899_p10 = scmp.lt.u32.totalorder %s897_s13, %s893_s10  ;;  %p901_p12 = scmp.lt.u32.totalorder %s893_s10, %s1188_s30 }
 0x21a   : > { %p895_p7 = pnand %p894_p4, %p1017_p5 }
 0x21b   : > { %p900_p11 = por %p899_p10, %p898_p9 }
 0x21c   : > { %p896_p8 = pneg %p895_p7 }
 0x21d   : > { %p902_p13 = por %p901_p12, %p900_p11 }
 0x21f   : > { %p903_p0 = pnand %p902_p13, %p896_p8 }
 0x221   : > { %906 = shalt.err (!%p903_p0)
}
 0x222   : > { %s946_s16 = smov 256   ;;  %s947_s23 = smov 512  }
 0x223   : > { %s948_s25 = smov 16  }
 0x224   : > { %833 = dma.vmem_to_hbm [thread:$0]  (%p1017_p5), %s1183_s17, 512, %s1188_s30, %s1190_s22, %s946_s16, %s947_s23, %s948_s25  }
 0x225 PF: > { %p839_p1 = scmp.ge.s32.totalorder %s941_s21, 2  ;;  %s619_s26 = sand.u32 1, %s929_s18  }
 0x226   : > { %s620_s6 = scalar_lea.sflag [#allocation3], %s619_s26 }
 0x227   : > { %p836_p2 = pnand %p839_p1, %p1021_p6 }
 0x229   : > { %924 = dma.done.wait (!%p836_p2), %s620_s6, 512  }
 0x22a   : > { %926 = vsyncadd (!%p836_p2), %s620_s6, 4294966784  ;;  %p15_p3 = scmp.ge.s32.totalorder %s1004_s24, 4   ;;  %s1241_s18 = smov %s933_s19 }
 0x22b   : > { %s1242_s19 = smov %s937_s20  ;;  %s1243_s20 = smov %s1015_s27 }
 0x22c   : > { %s1244_s21 = smov %s1004_s24  ;;  %17 = sbr.rel (!%p15_p3) target bundleno = 3 (0x3), region = 75 }
 0x233   :  { %625 = vsyncpa [#allocation3], 1 }
 0x234   :  { %627 = vsyncpa [#allocation3 + $0x1], 1 }

</bundles_post_ra>
